<compile_context>
chip_gen: v5e
topology: v5e:2x2
jax: 0.10.0
libtpu: 0.0.40
codegen_flags: <defaults>
</compile_context>

<pallas_src>
import functools

import jax
import jax.numpy as jnp
import numpy as np
from jax.experimental import pallas as pl
from jax.experimental.pallas import tpu as pltpu


# ----------------------------- Pallas kernel --------------------------------
def _pam_attend_kernel(x_ref, w_ref, b_ref, o_ref, *, key_ch, val_ch, br_tile, seq_len):
    C = val_ch
    K = key_ch
    L = seq_len
    D = 2 * K + C

    # Fused QKV projection: one matmul over all subregions in this block.
    x = x_ref[...].reshape(br_tile * L, C)                                  # (BT*L, C)
    qkv = jnp.dot(x, w_ref[...], preferred_element_type=jnp.float32) + b_ref[...]
    qkv = qkv.reshape(br_tile, L, D)

    q = qkv[:, :, :K]            # key_ch**-0.5 already folded into w/b
    k = qkv[:, :, K:2 * K]
    v = qkv[:, :, 2 * K:]

    # Batched attention over the BT subregions of this grid step.
    e = jnp.einsum("blk,bmk->blm", q, k, preferred_element_type=jnp.float32)
    e = e - jnp.max(e, axis=-1, keepdims=True)
    p = jnp.exp(e)
    a = p * pl.reciprocal(jnp.sum(p, axis=-1, keepdims=True), approx=True)
    r = jnp.einsum("blm,bmc->blc", a, v, preferred_element_type=jnp.float32)  # (BT, L, C)

    # Lane-dense store: pack two subregions side-by-side -> last dim 2C >= 128,
    # so each store is a full-lane (L, 2C) vst (no masked partial stores).
    for j in range(br_tile // 2):
        o_ref[j] = jnp.concatenate([r[2 * j], r[2 * j + 1]], axis=-1)


def pam_attend_pallas(x_sub, w_qkv, b_qkv, key_ch):
    """x_sub: (BR, L, C) f32; w_qkv: (C, 2K+C); b_qkv: (1, 2K+C). Returns (BR, L, C)."""
    BR, L, C = x_sub.shape
    D = w_qkv.shape[1]
    assert D == 2 * key_ch + C

    # Coarse grid: prefer 2 steps (so the v7x megacore can shard them), each
    # step processing BR//2 subregions; fall back to a single step otherwise.
    if BR % 2 == 0 and (BR // 2) % 2 == 0:
        G = 2
    else:
        G = 1
    BT = BR // G
    assert BT % 2 == 0, "need an even number of subregions per step for lane packing"

    kernel = functools.partial(
        _pam_attend_kernel, key_ch=key_ch, val_ch=C, br_tile=BT, seq_len=L)

    flops = BR * (2 * L * C * D + 2 * L * L * key_ch + 2 * L * L * C)
    cost = pl.CostEstimate(
        flops=flops,
        transcendentals=BR * (L * L + L),
        bytes_accessed=4 * (2 * BR * L * C + C * D + D),
    )

    out_packed = pl.pallas_call(
        kernel,
        out_shape=jax.ShapeDtypeStruct((BR // 2, L, 2 * C), jnp.float32),
        grid=(G,),
        in_specs=[
            pl.BlockSpec((BT, L, C), lambda i: (i, 0, 0)),
            pl.BlockSpec((C, D), lambda i: (0, 0)),
            pl.BlockSpec((1, D), lambda i: (0, 0)),
        ],
        out_specs=pl.BlockSpec((BT // 2, L, 2 * C), lambda i: (i, 0, 0)),
        compiler_params=pltpu.CompilerParams(dimension_semantics=("parallel",)),
        cost_estimate=cost,
    )(x_sub, w_qkv, b_qkv)

    # Undo the lane pairing: (BR//2, L, 2C) -> (BR, L, C).
    out = out_packed.reshape(BR // 2, L, 2, C).transpose(0, 2, 1, 3).reshape(BR, L, C)
    return out


# ------------------------------- JAX glue ------------------------------------
def avg_pool_nchw(x, ds):
    if ds == 1:
        return x
    b, c, h, w = x.shape
    return x.reshape(b, c, h // ds, ds, w // ds, ds).mean(axis=(3, 5))


def nearest_upsample_nchw(x, ds):
    if ds == 1:
        return x
    return jnp.repeat(jnp.repeat(x, ds, axis=2), ds, axis=3)


def pam_block_forward(x, *, scale, ds, attend_fn):
    """x: NCHW float32. Replicates PAMBlock.forward exactly (eval mode)."""
    xr = avg_pool_nchw(x, ds)
    b, c, h, w = xr.shape
    s = scale
    # _split_subregions -> (BR, C, L), then to kernel layout (BR, L, C).
    # (kept as wrapper reshapes on a ~32 KB tensor: at this size the coarse
    #  in-kernel grid is the higher-value choice than index_map windowing.)
    x_sub = xr.reshape(b, c, s, h // s, s, w // s)
    x_sub = x_sub.transpose(0, 2, 4, 1, 3, 5).reshape(b * s * s, c, -1)
    x_sub = x_sub.transpose(0, 2, 1)  # (BR, L, C)

    out = attend_fn(x_sub)            # (BR, L, C)

    # _recons_whole
    out = out.transpose(0, 2, 1)      # (BR, C, L)
    out = out.reshape(b, s, s, c, h // s, w // s)
    out = out.transpose(0, 3, 1, 4, 2, 5).reshape(b, c, h, w)
    # F.interpolate(scale_factor=ds)  (default mode='nearest')
    return nearest_upsample_nchw(out, ds)


def attend_reference(x_sub, wq, bq, wk, bk, wv, bv):
    key_ch = wq.shape[1]
    q = x_sub @ wq + bq
    k = x_sub @ wk + bk
    v = x_sub @ wv + bv
    e = jnp.einsum("blk,bmk->blm", q, k) * key_ch ** (-0.5)
    a = jax.nn.softmax(e, axis=-1)
    return jnp.einsum("blm,bmc->blc", a, v)


# --------------------------- parameter construction ---------------------------
def make_params(key, in_ch):
    key_ch = in_ch // 8
    eps = 1e-5
    ks = jax.random.split(key, 12)

    def conv_bn(w_key, g_key, b_key, m_key, v_key, out_ch):
        # conv weight (out_ch, in_ch), no bias; BN in eval mode, folded.
        w = 0.1 * jax.random.normal(w_key, (out_ch, in_ch), jnp.float32)
        gamma = 1.0 + 0.1 * jax.random.normal(g_key, (out_ch,), jnp.float32)
        beta = 0.1 * jax.random.normal(b_key, (out_ch,), jnp.float32)
        mean = 0.1 * jax.random.normal(m_key, (out_ch,), jnp.float32)
        var = 0.5 + jnp.abs(jax.random.normal(v_key, (out_ch,), jnp.float32))
        s = gamma / jnp.sqrt(var + eps)
        w_eff = (w * s[:, None]).T          # (in_ch, out_ch)
        b_eff = (beta - mean * s)[None, :]  # (1, out_ch)
        return w_eff, b_eff

    wq, bq = conv_bn(ks[0], ks[1], ks[2], ks[3], ks[4], key_ch)
    wk, bk = conv_bn(ks[5], ks[6], ks[7], ks[8], ks[9], key_ch)
    # conv_v: 1x1 conv with bias, no norm.  PyTorch conv weight is (out, in);
    # the channels-last matmul applies x @ W.T, so transpose once here.
    wv_conv = 0.1 * jax.random.normal(ks[10], (in_ch, in_ch), jnp.float32)  # (out, in)
    wv = wv_conv.T                                                          # (in, out)
    bv = (0.1 * jax.random.normal(ks[11], (in_ch,), jnp.float32))[None, :]
    return {"wq": wq, "bq": bq, "wk": wk, "bk": bk, "wv": wv, "bv": bv}


def fuse_qkv_params(params, key_ch):
    """Concatenate Q|K|V projections; fold key_ch**-0.5 into the Q columns."""
    scale = float(key_ch) ** (-0.5)
    w_qkv = jnp.concatenate(
        [params["wq"] * scale, params["wk"], params["wv"]], axis=1)
    b_qkv = jnp.concatenate(
        [params["bq"] * scale, params["bk"], params["bv"]], axis=1)
    return w_qkv, b_qkv


# ----------------------------------- main -------------------------------------
if __name__ == "__main__":
    batch, in_ch, H, W = 2, 64, 16, 16
    scale, ds = 2, 2
    key_ch = in_ch // 8

    root = jax.random.PRNGKey(0)
    kx, kp = jax.random.split(root)
    x = jax.random.normal(kx, (batch, in_ch, H, W), jnp.float32)
    params = make_params(kp, in_ch)
    w_qkv, b_qkv = fuse_qkv_params(params, key_ch)

    pallas_attend = lambda xs: pam_attend_pallas(xs, w_qkv, b_qkv, key_ch)
    ref_attend = lambda xs: attend_reference(
        xs, params["wq"], params["bq"], params["wk"],
        params["bk"], params["wv"], params["bv"])

    fwd = jax.jit(lambda xx: pam_block_forward(
        xx, scale=scale, ds=ds, attend_fn=pallas_attend))
    out = jax.block_until_ready(fwd(x))

    ref = pam_block_forward(x, scale=scale, ds=ds, attend_fn=ref_attend)
    ref = jax.block_until_ready(ref)

    assert out.shape == (batch, in_ch, H, W), out.shape
    # approx=True reciprocal in the softmax -> compare at 2e-3 (still catches
    # any real layout/orientation bug, which would be O(1) off).
    np.testing.assert_allclose(np.asarray(out), np.asarray(ref),
                               rtol=2e-3, atol=2e-3)
    print("KERNEL_OK")
</pallas_src>

<mosaic_0001>
module attributes {stable_mosaic.version = 11 : i64} {
  func.func @_pam_attend_kernel(%arg0: i32, %arg1: memref<4x16x64xf32, #tpu.memory_space<vmem>>, %arg2: memref<64x80xf32, #tpu.memory_space<vmem>>, %arg3: memref<1x80xf32, #tpu.memory_space<vmem>>, %arg4: memref<2x16x128xf32, #tpu.memory_space<vmem>>) attributes {dimension_semantics = [#tpu.dimension_semantics<parallel>], iteration_bounds = array<i64: 2>, scalar_prefetch = 0 : i64, scratch_operands = 0 : i64, tpu.core_type = #tpu.core_type<tc>, window_params = [{transform_indices = @transform_0, window_bounds = array<i64: 4, 16, 64>}, {pipeline_mode = #tpu.pipeline_mode<synchronous>, transform_indices = @transform_1, window_bounds = array<i64: 64, 80>}, {pipeline_mode = #tpu.pipeline_mode<synchronous>, transform_indices = @transform_2, window_bounds = array<i64: 1, 80>}, {transform_indices = @transform_3, window_bounds = array<i64: 2, 16, 128>}]} {
    %c0 = arith.constant 0 : index
    %c0_0 = arith.constant 0 : index
    %c0_1 = arith.constant 0 : index
    %0 = vector.load %arg1[%c0, %c0_0, %c0_1] : memref<4x16x64xf32, #tpu.memory_space<vmem>>, vector<4x16x64xf32>
    %1 = vector.shape_cast %0 : vector<4x16x64xf32> to vector<64x64xf32>
    %c0_2 = arith.constant 0 : index
    %c0_3 = arith.constant 0 : index
    %2 = vector.load %arg2[%c0_2, %c0_3] : memref<64x80xf32, #tpu.memory_space<vmem>>, vector<64x80xf32>
    %cst = arith.constant dense<0.000000e+00> : vector<64x80xf32>
    %3 = tpu.matmul %1, %2, %cst {dimension_numbers = #tpu.dot_dimension_numbers<[1], [0], [0], [1], [0, 0, 1, 1], [], []>} : vector<64x64xf32>, vector<64x80xf32>, vector<64x80xf32> -> vector<64x80xf32>
    %c0_4 = arith.constant 0 : index
    %c0_5 = arith.constant 0 : index
    %4 = vector.load %arg3[%c0_4, %c0_5] : memref<1x80xf32, #tpu.memory_space<vmem>>, vector<1x80xf32>
    %5 = vector.broadcast %4 : vector<1x80xf32> to vector<64x80xf32>
    %6 = arith.addf %3, %5 : vector<64x80xf32>
    %7 = vector.shape_cast %6 : vector<64x80xf32> to vector<4x16x80xf32>
    %8 = vector.extract_strided_slice %7 {offsets = [0, 0, 0], sizes = [4, 16, 8], strides = [1, 1, 1]} : vector<4x16x80xf32> to vector<4x16x8xf32>
    %9 = vector.extract_strided_slice %7 {offsets = [0, 0, 8], sizes = [4, 16, 8], strides = [1, 1, 1]} : vector<4x16x80xf32> to vector<4x16x8xf32>
    %10 = vector.extract_strided_slice %7 {offsets = [0, 0, 16], sizes = [4, 16, 64], strides = [1, 1, 1]} : vector<4x16x80xf32> to vector<4x16x64xf32>
    "tpu.trace_start"() <{level = 10 : i32, message = "blk,bmk->blm"}> : () -> ()
    %cst_6 = arith.constant dense<0.000000e+00> : vector<4x16x16xf32>
    %11 = tpu.matmul %8, %9, %cst_6 {dimension_numbers = #tpu.dot_dimension_numbers<[2], [2], [1], [1], [0, 0, 0, 1, 1, 1], [0], [0]>} : vector<4x16x8xf32>, vector<4x16x8xf32>, vector<4x16x16xf32> -> vector<4x16x16xf32>
    "tpu.trace_stop"() : () -> ()
    %cst_7 = arith.constant dense<0xFF800000> : vector<4x16xf32>
    %12 = vector.multi_reduction <maximumf>, %11, %cst_7 [2] : vector<4x16x16xf32> to vector<4x16xf32>
    %13 = vector.shape_cast %12 : vector<4x16xf32> to vector<4x16x1xf32>
    %14 = vector.broadcast %13 : vector<4x16x1xf32> to vector<4x16x16xf32>
    %15 = arith.subf %11, %14 : vector<4x16x16xf32>
    %16 = math.exp %15 : vector<4x16x16xf32>
    %cst_8 = arith.constant dense<0.000000e+00> : vector<4x16xf32>
    %17 = vector.multi_reduction <add>, %16, %cst_8 [2] : vector<4x16x16xf32> to vector<4x16xf32>
    %18 = vector.shape_cast %17 : vector<4x16xf32> to vector<4x16x1xf32>
    %19 = tpu.reciprocal %18 {approx = true} : vector<4x16x1xf32> -> vector<4x16x1xf32>
    %20 = vector.broadcast %19 : vector<4x16x1xf32> to vector<4x16x16xf32>
    %21 = arith.mulf %16, %20 : vector<4x16x16xf32>
    "tpu.trace_start"() <{level = 10 : i32, message = "blm,bmc->blc"}> : () -> ()
    %cst_9 = arith.constant dense<0.000000e+00> : vector<4x16x64xf32>
    %22 = tpu.matmul %21, %10, %cst_9 {dimension_numbers = #tpu.dot_dimension_numbers<[2], [1], [1], [2], [0, 0, 0, 1, 1, 2], [0], [0]>} : vector<4x16x16xf32>, vector<4x16x64xf32>, vector<4x16x64xf32> -> vector<4x16x64xf32>
    "tpu.trace_stop"() : () -> ()
    %23 = vector.extract_strided_slice %22 {offsets = [0, 0, 0], sizes = [1, 16, 64], strides = [1, 1, 1]} : vector<4x16x64xf32> to vector<1x16x64xf32>
    %24 = vector.shape_cast %23 : vector<1x16x64xf32> to vector<16x64xf32>
    %25 = vector.extract_strided_slice %22 {offsets = [1, 0, 0], sizes = [1, 16, 64], strides = [1, 1, 1]} : vector<4x16x64xf32> to vector<1x16x64xf32>
    %26 = vector.shape_cast %25 : vector<1x16x64xf32> to vector<16x64xf32>
    %27 = tpu.concatenate %24, %26 in 1 : vector<16x64xf32>, vector<16x64xf32> -> vector<16x128xf32>
    %c0_10 = arith.constant 0 : index
    %c0_11 = arith.constant 0 : index
    %c0_12 = arith.constant 0 : index
    %28 = vector.load %arg4[%c0_10, %c0_11, %c0_12] : memref<2x16x128xf32, #tpu.memory_space<vmem>>, vector<1x16x128xf32>
    %29 = vector.shape_cast %28 : vector<1x16x128xf32> to vector<16x128xf32>
    %30 = vector.shape_cast %27 : vector<16x128xf32> to vector<1x16x128xf32>
    tpu.vector_store %arg4[%c0_10, %c0_11, %c0_12], %30 {strides = array<i32>} : memref<2x16x128xf32, #tpu.memory_space<vmem>>, vector<1x16x128xf32>,
    %31 = vector.extract_strided_slice %22 {offsets = [2, 0, 0], sizes = [1, 16, 64], strides = [1, 1, 1]} : vector<4x16x64xf32> to vector<1x16x64xf32>
    %32 = vector.shape_cast %31 : vector<1x16x64xf32> to vector<16x64xf32>
    %33 = vector.extract_strided_slice %22 {offsets = [3, 0, 0], sizes = [1, 16, 64], strides = [1, 1, 1]} : vector<4x16x64xf32> to vector<1x16x64xf32>
    %34 = vector.shape_cast %33 : vector<1x16x64xf32> to vector<16x64xf32>
    %35 = tpu.concatenate %32, %34 in 1 : vector<16x64xf32>, vector<16x64xf32> -> vector<16x128xf32>
    %c1 = arith.constant 1 : index
    %c0_13 = arith.constant 0 : index
    %c0_14 = arith.constant 0 : index
    %36 = vector.load %arg4[%c1, %c0_13, %c0_14] : memref<2x16x128xf32, #tpu.memory_space<vmem>>, vector<1x16x128xf32>
    %37 = vector.shape_cast %36 : vector<1x16x128xf32> to vector<16x128xf32>
    %38 = vector.shape_cast %35 : vector<16x128xf32> to vector<1x16x128xf32>
    tpu.vector_store %arg4[%c1, %c0_13, %c0_14], %38 {strides = array<i32>} : memref<2x16x128xf32, #tpu.memory_space<vmem>>, vector<1x16x128xf32>,
    return
  }
  func.func @transform_0(%arg0: i32) -> (i32, i32, i32) {
    %c0_i32 = arith.constant 0 : i32
    %c0_i32_0 = arith.constant 0 : i32
    %c0_i32_1 = arith.constant 0 : i32
    return %arg0, %c0_i32, %c0_i32_0 : i32, i32, i32
  }
  func.func @transform_1(%arg0: i32) -> (i32, i32) {
    %c0_i32 = arith.constant 0 : i32
    %c0_i32_0 = arith.constant 0 : i32
    %c0_i32_1 = arith.constant 0 : i32
    return %c0_i32, %c0_i32_0 : i32, i32
  }
  func.func @transform_2(%arg0: i32) -> (i32, i32) {
    %c0_i32 = arith.constant 0 : i32
    %c0_i32_0 = arith.constant 0 : i32
    %c0_i32_1 = arith.constant 0 : i32
    return %c0_i32, %c0_i32_0 : i32, i32
  }
  func.func @transform_3(%arg0: i32) -> (i32, i32, i32) {
    %c0_i32 = arith.constant 0 : i32
    %c0_i32_0 = arith.constant 0 : i32
    %c0_i32_1 = arith.constant 0 : i32
    return %arg0, %c0_i32, %c0_i32_0 : i32, i32, i32
  }
}

</mosaic_0001>

<bundles_post_ra>
// kernel: _lambda_.1
= control target key start
LH: loop header
LB: loop body
LE: loop exit
PB: predicated region body
PF: predicated region fallthrough
CT: control target
= control target key end

     0   :  { %s878_s12 = smov 0   ;;  %s1050_s0 = inlined_call_operand.vmem [shape: f32[8,16,64], index: 0, kind: input, shape index: {}]   ;;  %s1051_s1 = inlined_call_operand.vmem [shape: f32[64,80], index: 1, kind: input, shape index: {}]   ;;  %s1052_s2 = inlined_call_operand.vmem [shape: f32[1,80], index: 2, kind: input, shape index: {}]   ;;  %s1053_s3 = inlined_call_operand.vmem [shape: f32[4,16,128], index: 3, kind: output, shape index: {}]  }
   0x1 LB: > { %s726_s13 = sadd.s32 4294967295, %s853_s12   ;;  %p730_p0 = scmp.ge.s32.totalorder %s853_s12, 1  ;;  %s853_s12 = sphi %s878_s12, %s13_s12  }
   0x2   : > { %p139_p1 = scmp.lt.s32.totalorder %s853_s12, 3 }
   0x4   : > { %p140_p2 = pnand %p730_p0, %p139_p1 }
   0x5   : > { %s731_s18 = sshll.u32 (!%p140_p2), %s726_s13, 2  ;;  %s855_s10 = smov (!%p140_p2), 120  }
   0x6   : > { %143 = sbr.rel (%p140_p2) target bundleno = 970 (0x3ca), region = 32  ;;  %p166_p3 = scmp.lt.s32.totalorder (!%p140_p2), %s731_s18, 7 }
   0x7   : > { %s856_s11 = smov (!%p140_p2), 112   ;;  %s857_s14 = smov (!%p140_p2), 64  }
   0x8   : > { %s734_s15 = sshll.u32 (!%p140_p2), %s726_s13, 1 }
   0x9   : > { %p173_p4 = scmp.lt.s32.totalorder (!%p140_p2), %s734_s15, 3 }
   0xb   : > { %v194_v0 = vld [vmem:[%s1051_s1 + $0x38] sm:$0xff]  ;;  %v193_v1 = vld [vmem:[%s1051_s1 + $0x30] sm:$0xff]  ;;  %v192_v2 = vld [vmem:[%s1051_s1 + $0x28] sm:$0xff]  ;;  %s1055_s18 = smov (!%p166_p3, %s731_s18), 7  ;;  %vm199_vm0 = vcmask 523264   ;;  %vm271_vm1 = vcmask 64512  }
   0xc   : > { %232 = vmatpush.msra.mxu0 %v194_v0  ;;  %775 = vmatpush.msra.mxu3 %v194_v0  ;;  %v191_v3 = vld [vmem:[%s1051_s1 + $0x20] sm:$0xff]  ;;  %v190_v4 = vld [vmem:[%s1051_s1 + $0x18] sm:$0xff]  ;;  %s773_s25 = sshll.u32 %s1055_s18, 4  ;;  %v189_v5 = vld [vmem:[%s1051_s1 + $0x10] sm:$0xff]  ;;  %vm414_vm2 = vcmask 130048   ;;  %s1057_s15 = smov (!%p173_p4, %s734_s15), 3 }
   0xd   : > { %v188_v6 = vld [vmem:[%s1051_s1 + $0x8] sm:$0xff]  ;;  %s170_s5 = scalar_lea.vmem %s1050_s0, %s773_s25  ;;  %v187_v7 = vld [vmem:[%s1051_s1] sm:$0xff]  ;;  %s774_s16 = sshll.u32 %s1057_s15, 4 }
   0xe   : > { %233 = vmatpush.msra.mxu0 %v193_v1  ;;  %776 = vmatpush.msra.mxu3 %v193_v1  ;;  %v179_v8 = vld [vmem:[%s170_s5] sm:$0xff]  ;;  %v185_v9 = vld [vmem:[%s170_s5 + $0x30] sm:$0xff]  ;;  %v180_v10 = vld [vmem:[%s170_s5 + $0x8] sm:$0xff]  ;;  %s177_s19 = scalar_lea.vmem %s1053_s3, %s774_s16 }
   0xf   : > { %v186_v11 = vld [vmem:[%s170_s5 + $0x38] sm:$0xff]  ;;  %v181_v12 = vld [vmem:[%s170_s5 + $0x10] sm:$0xff]  ;;  %v183_v14 = vld [vmem:[%s170_s5 + $0x20] sm:$0xff] }
  0x10   : > { %234 = vmatpush.msra.mxu0 %v192_v2  ;;  %777 = vmatpush.msra.mxu3 %v192_v2  ;;  %v182_v13 = vld [vmem:[%s170_s5 + $0x18] sm:$0xff]  ;;  %v184_v15 = vld [vmem:[%s170_s5 + $0x28] sm:$0xff]  ;;  %v814_v18 = vld [vmem:[%s1052_s2] ss:$0 sm:$0xff] }
  0x12   : > { %235 = vmatpush.msra.mxu0 %v191_v3  ;;  %778 = vmatpush.msra.mxu3 %v191_v3 }
  0x14   : > { %236 = vmatpush.msra.mxu0 %v190_v4  ;;  %779 = vmatpush.msra.mxu3 %v190_v4 }
  0x16   : > { %237 = vmatpush.msra.mxu0 %v189_v5  ;;  %780 = vmatpush.msra.mxu3 %v189_v5 }
  0x18   : > { %238 = vmatpush.msra.mxu0 %v188_v6  ;;  %781 = vmatpush.msra.mxu3 %v188_v6 }
  0x1a   : > { %239 = vmatpush.msra.mxu0 %v187_v7  ;;  %782 = vmatpush.msra.mxu3 %v187_v7 }
  0x1b   : > { %737 = vmatmul.msk.f32.vlgmr.msra.gmra.mxu0 %vm199_vm0, %v179_v8  ;;  %743 = vmatmul.msk.f32.vlgmr.msra.gmra.mxu3 %vm199_vm0, %v185_v9 }
  0x23   : > { %738 = vmatmul.msk.f32.gmra.mxu0 %vm199_vm0, %v180_v10  ;;  %744 = vmatmul.msk.f32.gmra.mxu3 %vm199_vm0, %v186_v11 }
  0x2b   : > { %739 = vmatmul.msk.f32.gmra.mxu0 %vm199_vm0, %v181_v12 }
  0x33   : > { %740 = vmatmul.msk.f32.gmra.mxu0 %vm199_vm0, %v182_v13 }
  0x3b   : > { %741 = vmatmul.msk.f32.gmra.mxu0 %vm199_vm0, %v183_v14 }
  0x43   : > { %742 = vmatmul.msk.f32.gmra.mxu0 %vm199_vm0, %v184_v15 }
  0x98   : > { %v241_v16 = vpop.f32.mrf.mxu0 }
  0x99   : > { %v931_v24 = vadd.f32 %v814_v18, %v241_v16 }
  0x9e   : > { %v259_v17 = vpop.f32.mrf.mxu3 }
  0x9f   : > { %v935_v25 = vadd.f32 %v814_v18, %v259_v17 }
  0xa0   : > { %v244_v19 = vpop.f32.mrf.mxu0 }
  0xa1   : > { %v926_v20 = vadd.f32 %v814_v18, %v244_v19 }
  0xa3   : > { %269 = vrot.lane.b32.xlu0 %v926_v20, %s855_s10  ;;  %v794_v57 = vpack.i.bf16 %v931_v24, %v926_v20 }
  0xa6   : > { %v262_v21 = vpop.f32.mrf.mxu3 }
  0xa7   : > { %v929_v22 = vadd.f32 %v814_v18, %v262_v21 }
  0xa8   : > { %v247_v23 = vpop.f32.mrf.mxu0 }
  0xa9   : > { %381 = vrot.lane.b32.xlu2 %v929_v22, %s855_s10  ;;  %v941_v29 = vadd.f32 %v814_v18, %v247_v23 }
  0xab   : > { %267 = vrot.lane.b32.xlu0 %v931_v24, %s855_s10 }
  0xb0   : > { %v250_v26 = vpop.f32.mrf.mxu0 }
  0xb1   : > { %v937_v27 = vadd.f32 %v814_v18, %v250_v26  ;;  %379 = vrot.lane.b32.xlu2 %v935_v25, %s855_s10 }
  0xb3   : > { %307 = vrot.lane.b32.xlu1 %v937_v27, %s855_s10 }
  0xb8   : > { %v253_v28 = vpop.f32.mrf.mxu0 }
  0xb9   : > { %v944_v30 = vadd.f32 %v814_v18, %v253_v28 }
  0xbb   : > { %305 = vrot.lane.b32.xlu1 %v941_v29, %s855_s10 }
  0xc0   : > { %v256_v31 = vpop.f32.mrf.mxu0 }
  0xc1   : > { %v946_v32 = vadd.f32 %v814_v18, %v256_v31 }
  0xc3   : > { %344 = vrot.lane.b32.xlu0 %v946_v32, %s855_s10  ;;  %342 = vrot.lane.b32.xlu1 %v944_v30, %s855_s10 }
 0x103   : > { %v382_v34 = vpop.permute.xlu2 %381 }
 0x10b   : > { %v380_v36 = vpop.permute.xlu2 %379 }
 0x115   : > { %v270_v33 = vpop.permute.xlu0 %269 }
 0x116   : > { %745 = vmatpush.xpose.msk.msra.mxu1 %vm271_vm1, %v270_v33  ;;  %v799_v33 = vpack.i.bf16 %v929_v22, %v937_v27 }
 0x11d   : > { %v268_v35 = vpop.permute.xlu0 %267 }
 0x11e   : > { %746 = vmatpush.xpose.msk.msra.mxu1 %vm271_vm1, %v268_v35  ;;  %v809_v35 = vpack.i.bf16 %v944_v30, %v946_v32 }
 0x121   : > { %747 = vmatmul.msk.f32.vlgmr.msra.gmra.mxu1 %vm271_vm1, %v931_v24 }
 0x122   : > { %757 = vmatpush.xpose.msk.msrb.mxu1 %vm271_vm1, %v382_v34  ;;  %v804_v34 = vpack.i.bf16 %v935_v25, %v941_v29 }
 0x125   : > { %v308_v37 = vpop.permute.xlu1 %307 }
 0x126   : > { %758 = vmatpush.xpose.msk.msrb.mxu1 %vm271_vm1, %v380_v36  ;;  %749 = vmatpush.xpose.msk.msra.mxu2 %vm271_vm1, %v308_v37 }
 0x129   : > { %748 = vmatmul.msk.f32.gmra.mxu1 %vm271_vm1, %v926_v20 }
 0x12d   : > { %v306_v38 = vpop.permute.xlu1 %305 }
 0x12e   : > { %750 = vmatpush.xpose.msk.msra.mxu2 %vm271_vm1, %v306_v38 }
 0x131   : > { %751 = vmatmul.msk.f32.vlgmr.msra.gmra.mxu2 %vm271_vm1, %v941_v29  ;;  %759 = vmatmul.msk.f32.vlgmr.msrb.gmra.mxu1 %vm271_vm1, %v935_v25 }
 0x135   : > { %v345_v39 = vpop.permute.xlu0 %344  ;;  %v343_v40 = vpop.permute.xlu1 %342 }
 0x136   : > { %753 = vmatpush.xpose.msk.msrb.mxu3 %vm271_vm1, %v345_v39 }
 0x139   : > { %752 = vmatmul.msk.f32.gmra.mxu2 %vm271_vm1, %v937_v27  ;;  %760 = vmatmul.msk.f32.gmra.mxu1 %vm271_vm1, %v929_v22 }
 0x13a   : > { %754 = vmatpush.xpose.msk.msrb.mxu3 %vm271_vm1, %v343_v40 }
 0x13d   : > { %755 = vmatmul.msk.f32.vlgmr.msrb.gmra.mxu3 %vm271_vm1, %v944_v30 }
 0x145   : > { %756 = vmatmul.msk.f32.gmra.mxu3 %vm271_vm1, %v946_v32 }
 0x19e   : > { %v297_v41 = vpop.f32.mrf.mxu1 }
 0x19f   : > { %v415_v42 = vsel %vm414_vm2, %v297_v41, -inf }
 0x1a0   : > { %416 = vmax.xlane.f32.xlu2 %v415_v42 }
 0x1a6   : > { %v300_v43 = vpop.f32.mrf.mxu1 }
 0x1a7   : > { %v418_v44 = vsel %vm414_vm2, %v300_v43, -inf }
 0x1a8   : > { %419 = vmax.xlane.f32.xlu0 %v418_v44 }
 0x1ae   : > { %v408_v45 = vpop.f32.mrf.mxu1 }
 0x1af   : > { %v433_v46 = vsel %vm414_vm2, %v408_v45, -inf }
 0x1b0   : > { %434 = vmax.xlane.f32.xlu2 %v433_v46 }
 0x1b4   : > { %v334_v47 = vpop.f32.mrf.mxu2 }
 0x1b5   : > { %v421_v48 = vsel %vm414_vm2, %v334_v47, -inf }
 0x1b6   : > { %422 = vmax.xlane.f32.xlu1 %v421_v48  ;;  %v411_v49 = vpop.f32.mrf.mxu1 }
 0x1b7   : > { %v436_v50 = vsel %vm414_vm2, %v411_v49, -inf }
 0x1b8   : > { %437 = vmax.xlane.f32.xlu0 %v436_v50 }
 0x1bc   : > { %v337_v51 = vpop.f32.mrf.mxu2 }
 0x1bd   : > { %v424_v52 = vsel %vm414_vm2, %v337_v51, -inf }
 0x1be   : > { %425 = vmax.xlane.f32.xlu2 %v424_v52 }
 0x1c0   : > { %v980_v53 = vpop.f32.mrf.mxu3 }
 0x1c1   : > { %v427_v54 = vsel %vm414_vm2, %v980_v53, -inf }
 0x1c2   : > { %428 = vmax.xlane.f32.xlu1 %v427_v54 }
 0x1c8   : > { %v984_v55 = vpop.f32.mrf.mxu3 }
 0x1c9   : > { %v430_v56 = vsel %vm414_vm2, %v984_v55, -inf }
 0x1ca   : > { %431 = vmax.xlane.f32.xlu0 %v430_v56 }
 0x1d6   : > { %795 = vrot.lane.b32.xlu2 %v794_v57, %s856_s11 }
 0x213   : > { %v417_v58 = vpop.xlane.xlu2 %416 }
 0x214   : > { %v439_v59 = vsub.f32 %v297_v41, %v417_v58 }
 0x216   : > { %v447_v60 = vmul.f32 1.442695, %v439_v59 }
 0x218   : > { %815 = vpow2.f32 %v447_v60 }
 0x21b   : > { %v420_v61 = vpop.xlane.xlu0 %419 }
 0x21c   : > { %v440_v62 = vsub.f32 %v300_v43, %v420_v61 }
 0x21e   : > { %v991_v63 = vpop.eup %815  ;;  %v449_v0 = vmul.f32 1.442695, %v440_v62 }
 0x21f   : > { %v463_v1 = vsel %vm414_vm2, %v991_v63, 0.0 }
 0x220   : > { %817 = vpow2.f32 %v449_v0  ;;  %464 = vadd.xlane.f32.xlu1 %v463_v1 }
 0x223   : > { %v435_v2 = vpop.xlane.xlu2 %434 }
 0x224   : > { %v445_v3 = vsub.f32 %v408_v45, %v435_v2 }
 0x226   : > { %v818_v4 = vpop.eup %817  ;;  %v459_v5 = vmul.f32 1.442695, %v445_v3 }
 0x227   : > { %v466_v6 = vsel %vm414_vm2, %v818_v4, 0.0 }
 0x228   : > { %819 = vpow2.f32 %v459_v5  ;;  %467 = vadd.xlane.f32.xlu0 %v466_v6 }
 0x229   : > { %v423_v7 = vpop.xlane.xlu1 %422 }
 0x22a   : > { %v441_v8 = vsub.f32 %v334_v47, %v423_v7 }
 0x22b   : > { %v438_v9 = vpop.xlane.xlu0 %437 }
 0x22c   : > { %v451_v10 = vmul.f32 1.442695, %v441_v8  ;;  %v446_v11 = vsub.f32 %v411_v49, %v438_v9 }
 0x22e   : > { %v996_v12 = vpop.eup %819  ;;  %821 = vpow2.f32 %v451_v10  ;;  %v461_v14 = vmul.f32 1.442695, %v446_v11 }
 0x22f   : > { %v481_v13 = vsel %vm414_vm2, %v996_v12, 0.0 }
 0x230   : > { %482 = vadd.xlane.f32.xlu1 %v481_v13  ;;  %823 = vpow2.f32 %v461_v14 }
 0x231   : > { %v426_v15 = vpop.xlane.xlu2 %425 }
 0x232   : > { %v442_v16 = vsub.f32 %v337_v51, %v426_v15 }
 0x234   : > { %v1000_v17 = vpop.eup %821  ;;  %v453_v18 = vmul.f32 1.442695, %v442_v16 }
 0x235   : > { %v469_v19 = vsel %vm414_vm2, %v1000_v17, 0.0  ;;  %v429_v36 = vpop.xlane.xlu1 %428 }
 0x236   : > { %825 = vpow2.f32 %v453_v18  ;;  %470 = vadd.xlane.f32.xlu0 %v469_v19  ;;  %v1004_v23 = vpop.eup %823  ;;  %v443_v37 = vsub.f32 %v980_v53, %v429_v36 }
 0x237   : > { %v484_v31 = vsel %vm414_vm2, %v1004_v23, 0.0 }
 0x238   : > { %v455_v38 = vmul.f32 1.442695, %v443_v37 }
 0x239   : > { %v796_v20 = vpop.permute.xlu2 %795 }
 0x23a   : > { %v797_v21 = vunpack.i.l.bf16 %v796_v20  ;;  %v798_v26 = vunpack.i.h.bf16 %v796_v20  ;;  %827 = vpow2.f32 %v455_v38 }
 0x23c   : > { %v1006_v24 = vpop.eup %825  ;;  %529 = vmatpush.msrb.mxu2 %v797_v21 }
 0x23d   : > { %v472_v28 = vsel %vm414_vm2, %v1006_v24, 0.0  ;;  %v432_v40 = vpop.xlane.xlu0 %431 }
 0x23e   : > { %473 = vadd.xlane.f32.xlu2 %v472_v28  ;;  %530 = vmatpush.msrb.mxu2 %v798_v26  ;;  %v444_v27 = vsub.f32 %v984_v55, %v432_v40 }
 0x23f   : > { %485 = vadd.xlane.f32.xlu0 %v484_v31 }
 0x240   : > { %v828_v39 = vpop.eup %827  ;;  %v457_v25 = vmul.f32 1.442695, %v444_v27 }
 0x241   : > { %v475_v22 = vsel %vm414_vm2, %v828_v39, 0.0 }
 0x242   : > { %829 = vpow2.f32 %v457_v25 }
 0x248   : > { %v830_v29 = vpop.eup %829 }
 0x249   : > { %800 = vrot.lane.b32.xlu1 %v799_v33, %s856_s11  ;;  %v478_v41 = vsel %vm414_vm2, %v830_v29, 0.0 }
 0x253   : > { %805 = vrot.lane.b32.xlu0 %v804_v34, %s856_s11 }
 0x25b   : > { %810 = vrot.lane.b32.xlu0 %v809_v35, %s856_s11 }
 0x273   : > { %476 = vadd.xlane.f32.xlu1 %v475_v22 }
 0x285   : > { %479 = vadd.xlane.f32.xlu0 %v478_v41 }
 0x293   : > { %v465_v30 = vpop.xlane.xlu1 %464 }
 0x294   : > { %831 = vrcp.f32 %v465_v30 }
 0x29a   : > { %v832_v32 = vpop.eup %831 }
 0x29b   : > { %v468_v42 = vpop.xlane.xlu0 %467  ;;  %v495_v43 = vmul.f32 %v832_v32, %v991_v63 }
 0x29c   : > { %833 = vrcp.f32 %v468_v42 }
 0x29d   : > { %761 = vmatmul.msk.f32.vlgmr.msrb.gmra.mxu2 %vm414_vm2, %v495_v43 }
 0x2a2   : > { %v834_v44 = vpop.eup %833 }
 0x2a3   : > { %v496_v45 = vmul.f32 %v834_v44, %v818_v4  ;;  %v483_v46 = vpop.xlane.xlu1 %482 }
 0x2a4   : > { %835 = vrcp.f32 %v483_v46 }
 0x2a5   : > { %762 = vmatmul.msk.f32.gmra.mxu2 %vm414_vm2, %v496_v45 }
 0x2a9   : > { %v471_v47 = vpop.xlane.xlu0 %470 }
 0x2aa   : > { %837 = vrcp.f32 %v471_v47  ;;  %v836_v53 = vpop.eup %835 }
 0x2ab   : > { %v501_v58 = vmul.f32 %v836_v53, %v996_v12 }
 0x2b0   : > { %v838_v54 = vpop.eup %837 }
 0x2b1   : > { %v474_v52 = vpop.xlane.xlu2 %473  ;;  %v497_v59 = vmul.f32 %v838_v54, %v1000_v17 }
 0x2b2   : > { %v486_v51 = vpop.xlane.xlu0 %485  ;;  %839 = vrcp.f32 %v474_v52 }
 0x2b3   : > { %841 = vrcp.f32 %v486_v51 }
 0x2b8   : > { %v840_v60 = vpop.eup %839 }
 0x2b9   : > { %v842_v61 = vpop.eup %841  ;;  %v498_v0 = vmul.f32 %v840_v60, %v1006_v24 }
 0x2ba   : > { %v502_v1 = vmul.f32 %v842_v61, %v1004_v23 }
 0x2bb   : > { %v801_v48 = vpop.permute.xlu1 %800 }
 0x2bc   : > { %v803_v49 = vunpack.i.h.bf16 %v801_v48  ;;  %v802_v50 = vunpack.i.l.bf16 %v801_v48 }
 0x2be   : > { %564 = vmatpush.msra.mxu3 %v802_v50  ;;  %634 = vmatpush.msra.mxu2 %v803_v49 }
 0x2c5   : > { %v806_v55 = vpop.permute.xlu0 %805 }
 0x2c6   : > { %v808_v56 = vunpack.i.h.bf16 %v806_v55  ;;  %v807_v57 = vunpack.i.l.bf16 %v806_v55 }
 0x2c8   : > { %565 = vmatpush.msra.mxu3 %v807_v57  ;;  %635 = vmatpush.msra.mxu2 %v808_v56 }
 0x2c9   : > { %763 = vmatmul.msk.f32.vlgmr.msra.gmra.mxu3 %vm414_vm2, %v497_v59  ;;  %767 = vmatmul.msk.f32.vlgmr.msra.gmra.mxu2 %vm414_vm2, %v501_v58 }
 0x2cd   : > { %v811_v62 = vpop.permute.xlu0 %810 }
 0x2ce   : > { %v812_v63 = vunpack.i.l.bf16 %v811_v62  ;;  %v813_v2 = vunpack.i.h.bf16 %v811_v62 }
 0x2d0   : > { %599 = vmatpush.msra.mxu1 %v812_v63 }
 0x2d1   : > { %764 = vmatmul.msk.f32.gmra.mxu3 %vm414_vm2, %v498_v0  ;;  %768 = vmatmul.msk.f32.gmra.mxu2 %vm414_vm2, %v502_v1 }
 0x2d2   : > { %600 = vmatpush.msra.mxu1 %v813_v2 }
 0x2e6   : > { %v477_v3 = vpop.xlane.xlu1 %476 }
 0x2e7   : > { %843 = vrcp.f32 %v477_v3 }
 0x2ed   : > { %v844_v4 = vpop.eup %843 }
 0x2ee   : > { %v499_v5 = vmul.f32 %v844_v4, %v828_v39 }
 0x2f0   : > { %765 = vmatmul.msk.f32.vlgmr.msra.gmra.mxu1 %vm414_vm2, %v499_v5 }
 0x2f8   : > { %v480_v6 = vpop.xlane.xlu0 %479 }
 0x2f9   : > { %845 = vrcp.f32 %v480_v6 }
 0x2ff   : > { %v846_v7 = vpop.eup %845 }
 0x300   : > { %v500_v8 = vmul.f32 %v846_v7, %v830_v29 }
 0x302   : > { %766 = vmatmul.msk.f32.gmra.mxu1 %vm414_vm2, %v500_v8 }
 0x320   : > { %v532_v9 = vpop.f32.mrf.mxu2 }
 0x328   : > { %v535_v10 = vpop.f32.mrf.mxu2 }
 0x34c   : > { %v567_v11 = vpop.f32.mrf.mxu3  ;;  %v637_v12 = vpop.f32.mrf.mxu2 }
 0x34d   : > { %645 = vrot.lane.b32.xlu2 %v567_v11, %s857_s14 }
 0x354   : > { %v570_v13 = vpop.f32.mrf.mxu3  ;;  %v640_v14 = vpop.f32.mrf.mxu2 }
 0x355   : > { %657 = vrot.lane.b32.xlu2 %v637_v12, %s857_s14  ;;  %647 = vrot.lane.b32.xlu1 %v570_v13, %s857_s14 }
 0x35d   : > { %659 = vrot.lane.b32.xlu2 %v640_v14, %s857_s14 }
 0x36d   : > { %v602_v17 = vpop.f32.mrf.mxu1 }
 0x37f   : > { %v605_v23 = vpop.f32.mrf.mxu1 }
 0x3a7   : > { %v646_v15 = vpop.permute.xlu2 %645 }
 0x3a8   : > { %v651_v16 = vsel %vm199_vm0, %v532_v9, %v646_v15 }
 0x3a9   : > { %653 = vst [vmem:[%s177_s19] sm:$0xff] %v651_v16 }
 0x3af   : > { %v658_v18 = vpop.permute.xlu2 %657 }
 0x3b0   : > { %v663_v19 = vsel %vm199_vm0, %v602_v17, %v658_v18 }
 0x3b1   : > { %769 = vst [vmem:[%s177_s19 + $0x10] sm:$0xff] %v663_v19 }
 0x3b7   : > { %v660_v20 = vpop.permute.xlu2 %659 }
 0x3b8   : > { %v664_v26 = vsel %vm199_vm0, %v605_v23, %v660_v20 }
 0x3b9   : > { %770 = vst [vmem:[%s177_s19 + $0x18] sm:$0xff] %v664_v26 }
 0x3c7   : > { %v648_v21 = vpop.permute.xlu1 %647 }
 0x3c8   : > { %v652_v24 = vsel %vm199_vm0, %v535_v10, %v648_v21 }
 0x3c9   : > { %654 = vst [vmem:[%s177_s19 + $0x8] sm:$0xff] %v652_v24 }
 0x3ca PF: > { %s13_s12 = sadd.s32 1, %s853_s12  }
 0x3cb   : > { %p10_p5 = scmp.ge.s32.totalorder %s13_s12, 4  }
 0x3cd   :  { %12 = sbr.rel (!%p10_p5) target bundleno = 1 (0x1), region = 63 }

</bundles_post_ra>
